<compile_context>
chip_gen: v6e
topology: v6e:2x2x1
jax: 0.10.0
libtpu: 0.0.40
codegen_flags: <defaults>
</compile_context>

<pallas_src>
import functools

import jax
import jax.numpy as jnp
from jax.experimental import pallas as pl
from jax.experimental.pallas import tpu as pltpu


def _gaussian_kernel(x_ref, o_ref, *, neg_half_inv_a2, compute_dtype):
    x = x_ref[...].astype(compute_dtype)
    c = jnp.asarray(neg_half_inv_a2, dtype=compute_dtype)
    o_ref[...] = jnp.exp(x * x * c).astype(o_ref.dtype)


def _tpu_generation():
    """Best-effort TPU generation sniff (block sizing only; safe fallback)."""
    try:
        kind = jax.devices()[0].device_kind.lower()
    except Exception:  # noqa: BLE001 - purely advisory
        kind = ""
    for tag in ("v2", "v3", "v4", "v5"):
        if tag in kind:
            return "old"          # <= v5: conservative VMEM budget, f32 EUP
    return "new"                  # v6e / v7x / unknown-future


def gaussian(x, a: float = 1.0):
    """Apply Gaussian activation elementwise via a Pallas TPU kernel."""
    # NOTE: `a` is a module-init Python constant (matches the nn.Module spec).
    # If a traced `a` is ever needed, pass it via SMEM/scalar-prefetch instead
    # of baking it into the closure (avoids per-value recompiles).
    neg_half_inv_a2 = -0.5 / float(a) ** 2

    orig_shape = x.shape
    in_dtype = x.dtype
    n = x.size
    if n == 0:
        return x

    # Output dtype: floats keep their dtype; integer inputs get a f32 output
    # (exp(...) in (0,1] would otherwise collapse to 0/1 in an int dtype).
    if jnp.issubdtype(in_dtype, jnp.floating):
        out_dtype = in_dtype
    else:
        out_dtype = jnp.float32

    gen = _tpu_generation()

    in_itemsize = jnp.dtype(in_dtype).itemsize
    out_itemsize = jnp.dtype(out_dtype).itemsize
    # Sublane packing factor of the narrowest dtype covers both in/out blocks.
    sub = {4: 8, 2: 16, 1: 32}.get(min(in_itemsize, out_itemsize), 8)
    # Size blocks for the widest dtype so the output buffers also fit.
    tile_itemsize = max(in_itemsize, out_itemsize)

    # Compute dtype: 16-bit native on v6e/v7x, f32 on v5e / low-precision in.
    if (gen == "new" and jnp.issubdtype(in_dtype, jnp.floating)
            and in_itemsize == 2):
        compute_dtype = in_dtype
    else:
        compute_dtype = jnp.float32

    # ------------------------------------------------------------------ tiling
    # Fast path: widest lane-dense last dim with zero padding.  Only lane
    # divisibility is required -- the row count may be ragged; Pallas masks
    # the final partial row-block.
    lane = None
    for cand in (2048, 1024, 512, 256, 128):
        if n % cand == 0:
            lane = cand
            break

    if lane is not None:
        rows = n // lane
        x2d = x.reshape(rows, lane)          # contiguous reshape (row-major)
        needs_unpad = False
    else:
        # TODO(synk): odd-sized tail could be handled with a masked store on
        # the final block instead of pad + post-kernel slice (extra HBM trips
        # only matter for already-small shapes).
        lane = 128
        rows = -(-n // lane)                 # ceil(n / lane); ragged rows OK
        padded = rows * lane
        x2d = jnp.pad(jnp.ravel(x), (0, padded - n)).reshape(rows, lane)
        needs_unpad = True

    # Block bytes: 8 MiB on v6e/v7x (per-step overhead ~0.35us becomes <6% of
    # block stream time; 4 live buffers = 32 MiB, covered by explicit
    # vmem_limit_bytes).  2 MiB on v5e (4 buffers = 8 MiB < 16 MiB default).
    if gen == "new":
        target_block_bytes = 8 * 1024 * 1024
        vmem_limit_bytes = 48 * 1024 * 1024
    else:
        target_block_bytes = 2 * 1024 * 1024
        vmem_limit_bytes = None

    if rows <= sub:
        tr = rows                            # block == full array on sublanes
    else:
        max_rows_by_bytes = max(
            sub, (target_block_bytes // (lane * tile_itemsize)) // sub * sub)
        tr = min(max_rows_by_bytes, (rows // sub) * sub)
        # Ensure >= 2 grid steps so both v7x TensorCores stream (harmless on
        # single-TC chips: one extra ~0.35us grid step).
        if pl.cdiv(rows, tr) == 1:
            half_rows = (rows + 1) // 2
            half_rows = ((half_rows + sub - 1) // sub) * sub
            tr = min(tr, half_rows)

    grid = (pl.cdiv(rows, tr),)              # ragged last block: masked writes

    kernel = functools.partial(_gaussian_kernel,
                               neg_half_inv_a2=neg_half_inv_a2,
                               compute_dtype=compute_dtype)

    cp_kwargs = dict(dimension_semantics=("parallel",))
    if vmem_limit_bytes is not None:
        cp_kwargs["vmem_limit_bytes"] = vmem_limit_bytes

    # NOTE: input_output_aliases={0: 0} would halve peak HBM footprint when
    # callers donate x; left off because donation is not guaranteed here.
    out2d = pl.pallas_call(
        kernel,
        out_shape=jax.ShapeDtypeStruct((rows, lane), out_dtype),
        grid_spec=pltpu.PrefetchScalarGridSpec(
            num_scalar_prefetch=0,
            grid=grid,
            in_specs=[pl.BlockSpec((tr, lane), lambda i: (i, 0))],
            out_specs=pl.BlockSpec((tr, lane), lambda i: (i, 0)),
        ),
        compiler_params=pltpu.CompilerParams(**cp_kwargs),
        cost_estimate=pl.CostEstimate(
            flops=2 * n,
            transcendentals=n,
            bytes_accessed=n * (in_itemsize + out_itemsize)),
    )(x2d)

    if needs_unpad:
        return out2d.reshape(-1)[:n].reshape(orig_shape)
    return out2d.reshape(orig_shape)


if __name__ == "__main__":
    key = jax.random.PRNGKey(0)
    a = 1.0

    # Main check: NCHW input, size divisible by 128 -> zero-copy fast path.
    x = jax.random.normal(key, (2, 4, 16, 16), dtype=jnp.float32)
    y = jax.block_until_ready(gaussian(x, a=a))
    y_ref = jnp.exp(-jnp.square(x) * (0.5 / a ** 2))
    assert y.shape == x.shape and y.dtype == x.dtype
    assert jnp.allclose(y, y_ref, atol=1e-6, rtol=1e-6)

    # Odd size -> padded fallback path stays correct.
    x2 = jax.random.normal(jax.random.PRNGKey(1), (3, 5, 7), dtype=jnp.float32)
    y2 = jax.block_until_ready(gaussian(x2, a=a))
    y2_ref = jnp.exp(-jnp.square(x2) * (0.5 / a ** 2))
    assert y2.shape == x2.shape and y2.dtype == x2.dtype
    assert jnp.allclose(y2, y2_ref, atol=1e-6, rtol=1e-6)

    # bf16 input: exercises relaxed fast path + 16-bit native compute (v6e+).
    x3 = jax.random.normal(jax.random.PRNGKey(2), (2, 8, 8, 24),
                           dtype=jnp.bfloat16)
    y3 = jax.block_until_ready(gaussian(x3, a=a))
    y3_ref = jnp.exp(-jnp.square(x3.astype(jnp.float32)) * (0.5 / a ** 2))
    assert y3.shape == x3.shape and y3.dtype == x3.dtype
    assert jnp.allclose(y3.astype(jnp.float32), y3_ref, atol=2e-2)

    print("KERNEL_OK")
</pallas_src>

<mosaic_0001>
module attributes {stable_mosaic.version = 11 : i64} {
  func.func @_gaussian_kernel(%arg0: i32, %arg1: memref<1x2048xf32, #tpu.memory_space<vmem>>, %arg2: memref<1x2048xf32, #tpu.memory_space<vmem>>) attributes {dimension_semantics = [#tpu.dimension_semantics<parallel>], iteration_bounds = array<i64: 1>, scalar_prefetch = 0 : i64, scratch_operands = 0 : i64, tpu.core_type = #tpu.core_type<tc>, window_params = [{transform_indices = @transform_0, window_bounds = array<i64: 1, 2048>}, {transform_indices = @transform_1, window_bounds = array<i64: 1, 2048>}]} {
    %c0 = arith.constant 0 : index
    %c0_0 = arith.constant 0 : index
    %0 = vector.load %arg1[%c0, %c0_0] : memref<1x2048xf32, #tpu.memory_space<vmem>>, vector<1x2048xf32>
    %1 = arith.mulf %0, %0 : vector<1x2048xf32>
    %cst = arith.constant -5.000000e-01 : f32
    %2 = vector.broadcast %cst : f32 to vector<1x2048xf32>
    %3 = arith.mulf %1, %2 : vector<1x2048xf32>
    %4 = math.exp %3 : vector<1x2048xf32>
    %c0_1 = arith.constant 0 : index
    %c0_2 = arith.constant 0 : index
    %5 = vector.load %arg2[%c0_1, %c0_2] : memref<1x2048xf32, #tpu.memory_space<vmem>>, vector<1x2048xf32>
    tpu.vector_store %arg2[%c0_1, %c0_2], %4 {strides = array<i32>} : memref<1x2048xf32, #tpu.memory_space<vmem>>, vector<1x2048xf32>,
    return
  }
  func.func @transform_0(%arg0: i32) -> (i32, i32) {
    %c0_i32 = arith.constant 0 : i32
    %c0_i32_0 = arith.constant 0 : i32
    return %arg0, %c0_i32 : i32, i32
  }
  func.func @transform_1(%arg0: i32) -> (i32, i32) {
    %c0_i32 = arith.constant 0 : i32
    %c0_i32_0 = arith.constant 0 : i32
    return %arg0, %c0_i32 : i32, i32
  }
}

</mosaic_0001>

<bundles_post_ra>
// kernel: tpu_custom_call.1
= control target key start
LH: loop header
LB: loop body
LE: loop exit
PB: predicated region body
PF: predicated region fallthrough
CT: control target
= control target key end

     0   :  { %6 = vsyncpa [#allocation3], 0  ;;  %s116_s0 = inlined_call_operand.hbm [shape: f32[1,2048], index: 0, kind: input, shape index: {}]   ;;  %s117_s1 = inlined_call_operand.hbm [shape: f32[1,2048], index: 1, kind: output, shape index: {}]  }
   0x1   :  { %7 = vsyncpa [#allocation4], 0  ;;  %s98_s6 = smov [#allocation2]  }
   0x2   :  { %s14_s7 = sshll.u32 %s98_s6, 4  ;;  %s15_s7 = int_to_ptr.vmem [resolvable:$true] %s14_s7 }
   0x3   :  { %s62_s8 = scalar_lea.vmem %s15_s7, 256  ;;  %p67_p1 = scmp.lt.s32.totalorder %s15_s7, %s15_s7 }
   0x4   :  { %p63_p0 = scmp.ne.s32.totalorder %s15_s7, %s62_s8  ;;  %p68_p2 = scmp.lt.s32.totalorder %s62_s8, %s62_s8 }
   0x6   :  { %p69_p3 = por %p68_p2, %p67_p1 }
   0x8   :  { %p70_p4 = pnand %p69_p3, %p63_p0 }
   0xa   :  { %73 = shalt.err (!%p70_p4)
}
   0xb   :  { %17 = dma.hbm_to_vmem [thread:$0]  %s116_s0, 256, %s15_s7, [#allocation3]  }
   0xc   :  { %94 = dma.done.wait [#allocation3], 256  }
   0xd   :  { %95 = vsyncadd [#allocation3], 4294967040  ;;  %v21_v0 = vld [vmem:[#allocation2] sm:$0xff]  ;;  %v22_v1 = vld [vmem:[#allocation2 + $0x8] sm:$0xff]  ;;  %s99_s11 = smov [#allocation5]  }
   0xe   :  { %v23_v2 = vmul.f32 %v21_v0, %v21_v0  ;;  %v24_v3 = vmul.f32 %v22_v1, %v22_v1  ;;  %s39_s12 = sshll.u32 %s99_s11, 4  ;;  %s40_s12 = int_to_ptr.vmem [resolvable:$true] %s39_s12 }
   0xf   :  { %s74_s0 = scalar_lea.vmem %s40_s12, 256  ;;  %p79_p6 = scmp.lt.s32.totalorder %s40_s12, %s40_s12 }
  0x10   :  { %v25_v4 = vmul.f32 -0.5, %v23_v2  ;;  %v26_v5 = vmul.f32 -0.5, %v24_v3  ;;  %p75_p5 = scmp.ne.s32.totalorder %s40_s12, %s74_s0  ;;  %p80_p7 = scmp.lt.s32.totalorder %s74_s0, %s74_s0 }
  0x12   :  { %v27_v6 = vmul.f32 1.442695, %v25_v4  ;;  %v29_v7 = vmul.f32 1.442695, %v26_v5  ;;  %p81_p8 = por %p80_p7, %p79_p6 }
  0x14   :  { %50 = vpow2.f32 %v27_v6  ;;  %p82_p9 = pnand %p81_p8, %p75_p5 }
  0x15   :  { %52 = vpow2.f32 %v29_v7 }
  0x21   :  { %v51_v8 = vpop.eup %50 }
  0x22   :  { %v53_v9 = vpop.eup %52  ;;  %31 = vst [vmem:[#allocation5] sm:$0xff] %v51_v8 }
  0x23   :  { %32 = vst [vmem:[#allocation5 + $0x8] sm:$0xff] %v53_v9 }
  0x24   :  { %85 = shalt.err (!%p82_p9)
}
  0x25   :  { %42 = dma.vmem_to_hbm [thread:$0]  %s40_s12, 256, %s117_s1, [#allocation4]  }
  0x26   :  { %96 = dma.done.wait [#allocation4], 256  }
  0x27   :  { %97 = vsyncadd [#allocation4], 4294967040 }
  0x28   :  { %46 = vsyncpa [#allocation3], 1 }
  0x29   :  { %47 = vsyncpa [#allocation4], 1 }

</bundles_post_ra>
